<compile_context>
chip_gen: v7x
topology: tpu7x:2x2x1
jax: 0.10.0
libtpu: 0.0.40
codegen_flags: <defaults>
</compile_context>

<pallas_src>
import functools

import jax
import jax.numpy as jnp
from jax import lax
from jax.experimental import pallas as pl
from jax.experimental.pallas import tpu as pltpu

N_EMBD = 64  # n_embd in the PyTorch module


def _round_up(x, m):
    return (x + m - 1) // m * m


def _head_kernel(x_ref, wq_ref, wk_ref, wv_ref, o_ref, k_sc, v_sc, *,
                 tile, head_size, scale, t_pad):
    # x_ref : (1, t_pad, C)   whole padded sequence for this batch element
    # w*_ref: (C, H)          projection weights (whole)
    # o_ref : (1, tile, H)    output tile for this q block
    # k_sc/v_sc: (t_pad, H) f32 scratch, persistent across grid steps
    qi = pl.program_id(1)
    n_kv_total = t_pad // tile  # static

    # --- K / V projection for the whole sequence, once per batch element ----
    @pl.when(qi == 0)
    def _():
        def proj(j, carry):
            start = pl.multiple_of(j * tile, tile)
            xb = x_ref[0, pl.ds(start, tile), :]                   # (tile, C)
            k_sc[pl.ds(start, tile), :] = jnp.dot(
                xb, wk_ref[...], preferred_element_type=jnp.float32)
            v_sc[pl.ds(start, tile), :] = jnp.dot(
                xb, wv_ref[...], preferred_element_type=jnp.float32)
            return carry
        lax.fori_loop(0, n_kv_total, proj, 0)

    # --- Q projection for this tile (1/sqrt(C) folded in here) --------------
    q_start = pl.multiple_of(qi * tile, tile)
    x_q = x_ref[0, pl.ds(q_start, tile), :]                        # (tile, C)
    q = jnp.dot(x_q, wq_ref[...],
                preferred_element_type=jnp.float32) * jnp.float32(scale)

    # --- flash attention over the causal range of kv tiles ------------------
    def body(ki, carry):
        m_prev, l_prev, acc_prev = carry
        k_start = pl.multiple_of(ki * tile, tile)
        k = k_sc[pl.ds(k_start, tile), :]                          # (tile, H)
        v = v_sc[pl.ds(k_start, tile), :]                          # (tile, H)
        # q @ k^T without materializing k.T: contract last dims of both.
        s = lax.dot_general(q, k, (((1,), (1,)), ((), ())),
                            preferred_element_type=jnp.float32)    # (tile, tile)
        row = qi * tile + lax.broadcasted_iota(jnp.int32, s.shape, 0)
        col = ki * tile + lax.broadcasted_iota(jnp.int32, s.shape, 1)
        s = jnp.where(col <= row, s, -jnp.inf)

        m_new = jnp.maximum(m_prev, s.max(axis=-1, keepdims=True))
        alpha = jnp.exp(m_prev - m_new)
        p = jnp.exp(s - m_new)
        l_new = alpha * l_prev + p.sum(axis=-1, keepdims=True)
        acc_new = alpha * acc_prev + jnp.dot(
            p, v, preferred_element_type=jnp.float32)
        return m_new, l_new, acc_new

    m0 = jnp.full((tile, 1), -jnp.inf, dtype=jnp.float32)
    l0 = jnp.zeros((tile, 1), dtype=jnp.float32)
    a0 = jnp.zeros((tile, head_size), dtype=jnp.float32)
    # Only the kv tiles that intersect the causal lower triangle (ki <= qi).
    _, l_fin, acc_fin = lax.fori_loop(0, qi + 1, body, (m0, l0, a0))

    # TODO(synk): nn.Dropout(0.2) on the attention weights is identity in eval
    # mode; training-mode dropout (pltpu.prng_*) is not implemented here.
    o_ref[0] = (acc_fin / l_fin).astype(o_ref.dtype)


def head_forward(x, w_key, w_query, w_value, *, max_tile=128):
    """x: (B, T, C); w_*: (C, H) (transposed PyTorch Linear, no bias).

    Returns (B, T, H), matching Head.forward in eval mode.
    """
    B, T, C = x.shape
    H = w_key.shape[1]
    scale = float(C) ** -0.5                     # PyTorch uses C ** (-0.5)

    # (8,128)-friendly tile; pad T up to a multiple of it.
    tile = min(max_tile, _round_up(T, 8))
    t_pad = _round_up(T, tile)
    x_p = jnp.pad(x, ((0, 0), (0, t_pad - T), (0, 0))) if t_pad != T else x
    n_t = t_pad // tile

    kernel = functools.partial(_head_kernel, tile=tile, head_size=H,
                               scale=scale, t_pad=t_pad)

    out_p = pl.pallas_call(
        kernel,
        out_shape=jax.ShapeDtypeStruct((B, t_pad, H), x.dtype),
        grid_spec=pltpu.PrefetchScalarGridSpec(
            num_scalar_prefetch=0,
            grid=(B, n_t),
            in_specs=[
                # Whole padded sequence; block index constant in qi -> one DMA
                # per batch element.
                pl.BlockSpec((1, t_pad, C), lambda b, qi: (b, 0, 0)),
                pl.BlockSpec((C, H), lambda b, qi: (0, 0)),   # w_query
                pl.BlockSpec((C, H), lambda b, qi: (0, 0)),   # w_key
                pl.BlockSpec((C, H), lambda b, qi: (0, 0)),   # w_value
            ],
            out_specs=pl.BlockSpec((1, tile, H), lambda b, qi: (b, qi, 0)),
            scratch_shapes=[
                pltpu.VMEM((t_pad, H), jnp.float32),   # K (whole sequence)
                pltpu.VMEM((t_pad, H), jnp.float32),   # V (whole sequence)
            ],
        ),
        compiler_params=pltpu.CompilerParams(
            dimension_semantics=("parallel", "arbitrary")),
    )(x_p, w_query, w_key, w_value)

    return out_p[:, :T, :] if t_pad != T else out_p


def head_forward_ref(x, w_key, w_query, w_value):
    """Pure-JAX reference mirroring the PyTorch forward (eval mode)."""
    B, T, C = x.shape
    k = x @ w_key
    q = x @ w_query
    v = x @ w_value
    wei = (q @ jnp.swapaxes(k, -2, -1)) * (C ** -0.5)
    tril = jnp.tril(jnp.ones((T, T), dtype=bool))
    wei = jnp.where(tril, wei, -jnp.inf)
    wei = jax.nn.softmax(wei, axis=-1)
    return wei @ v


if __name__ == "__main__":
    C = N_EMBD
    head_size = 16

    key = jax.random.PRNGKey(0)
    kx, kk, kq, kv, kx2 = jax.random.split(key, 5)

    # Deterministic "Linear(no bias)" weights, stored transposed as (C, H).
    w_key = jax.random.normal(kk, (C, head_size), dtype=jnp.float32) * 0.02
    w_query = jax.random.normal(kq, (C, head_size), dtype=jnp.float32) * 0.02
    w_value = jax.random.normal(kv, (C, head_size), dtype=jnp.float32) * 0.02

    # Primary small-shape check (B=2, T=8, C=64).
    B, T = 2, 8
    x = jax.random.normal(kx, (B, T, C), dtype=jnp.float32)
    out = jax.block_until_ready(head_forward(x, w_key, w_query, w_value))
    ref = head_forward_ref(x, w_key, w_query, w_value)
    assert out.shape == (B, T, head_size)
    assert jnp.allclose(out, ref, atol=2e-3, rtol=2e-3)

    # Secondary check exercising q tiling, padding and the causal kv loop.
    T2 = 200
    x2 = jax.random.normal(kx2, (B, T2, C), dtype=jnp.float32)
    out2 = jax.block_until_ready(head_forward(x2, w_key, w_query, w_value))
    ref2 = head_forward_ref(x2, w_key, w_query, w_value)
    assert out2.shape == (B, T2, head_size)
    assert jnp.allclose(out2, ref2, atol=2e-3, rtol=2e-3)

    print("KERNEL_OK")
</pallas_src>

<mosaic_0001>
module attributes {stable_mosaic.version = 11 : i64} {
  func.func @_head_kernel(%arg0: i32, %arg1: i32, %arg2: memref<1x8x64xf32, #tpu.memory_space<vmem>>, %arg3: memref<64x16xf32, #tpu.memory_space<vmem>>, %arg4: memref<64x16xf32, #tpu.memory_space<vmem>>, %arg5: memref<64x16xf32, #tpu.memory_space<vmem>>, %arg6: memref<1x8x16xf32, #tpu.memory_space<vmem>>, %arg7: memref<8x16xf32, #tpu.memory_space<vmem>>, %arg8: memref<8x16xf32, #tpu.memory_space<vmem>>) attributes {dimension_semantics = [#tpu.dimension_semantics<parallel>, #tpu.dimension_semantics<arbitrary>], iteration_bounds = array<i64: 2, 1>, scalar_prefetch = 0 : i64, scratch_operands = 2 : i64, tpu.core_type = #tpu.core_type<tc>, window_params = [{transform_indices = @transform_0, window_bounds = array<i64: 1, 8, 64>}, {pipeline_mode = #tpu.pipeline_mode<synchronous>, transform_indices = @transform_1, window_bounds = array<i64: 64, 16>}, {pipeline_mode = #tpu.pipeline_mode<synchronous>, transform_indices = @transform_2, window_bounds = array<i64: 64, 16>}, {pipeline_mode = #tpu.pipeline_mode<synchronous>, transform_indices = @transform_3, window_bounds = array<i64: 64, 16>}, {transform_indices = @transform_4, window_bounds = array<i64: 1, 8, 16>}]} {
    %c0_i32 = arith.constant 0 : i32
    %0 = arith.cmpi eq, %arg1, %c0_i32 : i32
    %1 = arith.extui %0 : i1 to i32
    %c0_i32_0 = arith.constant 0 : i32
    %2 = arith.cmpi ne, %1, %c0_i32_0 : i32
    scf.if %2 {
      %c0_i32_13 = arith.constant 0 : i32
      %c8_i32_14 = arith.constant 8 : i32
      %24 = arith.muli %c0_i32_13, %c8_i32_14 : i32
      %25 = tpu.assume_multiple %24, 8 : i32
      %c0_15 = arith.constant 0 : index
      %26 = arith.index_cast %25 : i32 to index
      %c0_16 = arith.constant 0 : index
      %27 = vector.load %arg2[%c0_15, %26, %c0_16] : memref<1x8x64xf32, #tpu.memory_space<vmem>>, vector<1x8x64xf32>
      %28 = vector.shape_cast %27 : vector<1x8x64xf32> to vector<8x64xf32>
      %c0_17 = arith.constant 0 : index
      %c0_18 = arith.constant 0 : index
      %29 = vector.load %arg4[%c0_17, %c0_18] : memref<64x16xf32, #tpu.memory_space<vmem>>, vector<64x16xf32>
      %cst_19 = arith.constant dense<0.000000e+00> : vector<8x16xf32>
      %30 = tpu.matmul %28, %29, %cst_19 {dimension_numbers = #tpu.dot_dimension_numbers<[1], [0], [0], [1], [0, 0, 1, 1], [], []>} : vector<8x64xf32>, vector<64x16xf32>, vector<8x16xf32> -> vector<8x16xf32>
      %31 = arith.index_cast %25 : i32 to index
      %c0_20 = arith.constant 0 : index
      %32 = vector.load %arg7[%31, %c0_20] : memref<8x16xf32, #tpu.memory_space<vmem>>, vector<8x16xf32>
      tpu.vector_store %arg7[%31, %c0_20], %30 {strides = array<i32>} : memref<8x16xf32, #tpu.memory_space<vmem>>, vector<8x16xf32>,
      %c0_21 = arith.constant 0 : index
      %c0_22 = arith.constant 0 : index
      %33 = vector.load %arg5[%c0_21, %c0_22] : memref<64x16xf32, #tpu.memory_space<vmem>>, vector<64x16xf32>
      %cst_23 = arith.constant dense<0.000000e+00> : vector<8x16xf32>
      %34 = tpu.matmul %28, %33, %cst_23 {dimension_numbers = #tpu.dot_dimension_numbers<[1], [0], [0], [1], [0, 0, 1, 1], [], []>} : vector<8x64xf32>, vector<64x16xf32>, vector<8x16xf32> -> vector<8x16xf32>
      %35 = arith.index_cast %25 : i32 to index
      %c0_24 = arith.constant 0 : index
      %36 = vector.load %arg8[%35, %c0_24] : memref<8x16xf32, #tpu.memory_space<vmem>>, vector<8x16xf32>
      tpu.vector_store %arg8[%35, %c0_24], %34 {strides = array<i32>} : memref<8x16xf32, #tpu.memory_space<vmem>>, vector<8x16xf32>,
      %c1_i32_25 = arith.constant 1 : i32
    } else {
    }
    %c8_i32 = arith.constant 8 : i32
    %3 = arith.muli %arg1, %c8_i32 : i32
    %4 = tpu.assume_multiple %3, 8 : i32
    %c0 = arith.constant 0 : index
    %5 = arith.index_cast %4 : i32 to index
    %c0_1 = arith.constant 0 : index
    %6 = vector.load %arg2[%c0, %5, %c0_1] : memref<1x8x64xf32, #tpu.memory_space<vmem>>, vector<1x8x64xf32>
    %7 = vector.shape_cast %6 : vector<1x8x64xf32> to vector<8x64xf32>
    %c0_2 = arith.constant 0 : index
    %c0_3 = arith.constant 0 : index
    %8 = vector.load %arg3[%c0_2, %c0_3] : memref<64x16xf32, #tpu.memory_space<vmem>>, vector<64x16xf32>
    %cst = arith.constant dense<0.000000e+00> : vector<8x16xf32>
    %9 = tpu.matmul %7, %8, %cst {dimension_numbers = #tpu.dot_dimension_numbers<[1], [0], [0], [1], [0, 0, 1, 1], [], []>} : vector<8x64xf32>, vector<64x16xf32>, vector<8x16xf32> -> vector<8x16xf32>
    %cst_4 = arith.constant 1.250000e-01 : f32
    %10 = vector.broadcast %cst_4 : f32 to vector<8x16xf32>
    %11 = arith.mulf %9, %10 : vector<8x16xf32>
    %cst_5 = arith.constant 0xFF800000 : f32
    %12 = vector.broadcast %cst_5 : f32 to vector<8x1xf32>
    %cst_6 = arith.constant 0.000000e+00 : f32
    %13 = vector.broadcast %cst_6 : f32 to vector<8x1xf32>
    %cst_7 = arith.constant 0.000000e+00 : f32
    %14 = vector.broadcast %cst_7 : f32 to vector<8x16xf32>
    %c1_i32 = arith.constant 1 : i32
    %15 = arith.addi %arg1, %c1_i32 : i32
    %c0_i32_8 = arith.constant 0 : i32
    %16 = arith.subi %15, %c0_i32_8 : i32
    %17 = arith.addi %c0_i32_8, %16 : i32
    %c1_i32_9 = arith.constant 1 : i32
    %18:3 = scf.for %arg9 = %c0_i32_8 to %17 step %c1_i32_9 iter_args(%arg10 = %12, %arg11 = %13, %arg12 = %14) -> (vector<8x1xf32>, vector<8x1xf32>, vector<8x16xf32>)  : i32 {
      %c8_i32_13 = arith.constant 8 : i32
      %24 = arith.muli %arg9, %c8_i32_13 : i32
      %25 = tpu.assume_multiple %24, 8 : i32
      %26 = arith.index_cast %25 : i32 to index
      %c0_14 = arith.constant 0 : index
      %27 = vector.load %arg7[%26, %c0_14] : memref<8x16xf32, #tpu.memory_space<vmem>>, vector<8x16xf32>
      %28 = arith.index_cast %25 : i32 to index
      %c0_15 = arith.constant 0 : index
      %29 = vector.load %arg8[%28, %c0_15] : memref<8x16xf32, #tpu.memory_space<vmem>>, vector<8x16xf32>
      %cst_16 = arith.constant dense<0.000000e+00> : vector<8x8xf32>
      %30 = tpu.matmul %11, %27, %cst_16 {dimension_numbers = #tpu.dot_dimension_numbers<[1], [1], [0], [0], [0, 0, 1, 0], [], []>} : vector<8x16xf32>, vector<8x16xf32>, vector<8x8xf32> -> vector<8x8xf32>
      %c8_i32_17 = arith.constant 8 : i32
      %31 = arith.muli %arg1, %c8_i32_17 : i32
      %32 = tpu.iota {dimensions = array<i32: 0>} : vector<8x8xi32>
      %33 = vector.broadcast %31 : i32 to vector<8x8xi32>
      %34 = arith.addi %33, %32 : vector<8x8xi32>
      %c8_i32_18 = arith.constant 8 : i32
      %35 = arith.muli %arg9, %c8_i32_18 : i32
      %36 = tpu.iota {dimensions = array<i32: 1>} : vector<8x8xi32>
      %37 = vector.broadcast %35 : i32 to vector<8x8xi32>
      %38 = arith.addi %37, %36 : vector<8x8xi32>
      %39 = arith.cmpi sle, %38, %34 : vector<8x8xi32>
      %cst_19 = arith.constant 0xFF800000 : f32
      %40 = vector.broadcast %cst_19 : f32 to vector<8x8xf32>
      %41 = arith.select %39, %30, %40 : vector<8x8xi1>, vector<8x8xf32>
      %cst_20 = arith.constant dense<0xFF800000> : vector<8xf32>
      %42 = vector.multi_reduction <maximumf>, %41, %cst_20 [1] : vector<8x8xf32> to vector<8xf32>
      %43 = vector.shape_cast %42 : vector<8xf32> to vector<8x1xf32>
      %44 = arith.maximumf %arg10, %43 : vector<8x1xf32>
      %45 = arith.subf %arg10, %44 : vector<8x1xf32>
      %46 = math.exp %45 : vector<8x1xf32>
      %47 = vector.broadcast %44 : vector<8x1xf32> to vector<8x8xf32>
      %48 = arith.subf %41, %47 : vector<8x8xf32>
      %49 = math.exp %48 : vector<8x8xf32>
      %50 = arith.mulf %46, %arg11 : vector<8x1xf32>
      %cst_21 = arith.constant dense<0.000000e+00> : vector<8xf32>
      %51 = vector.multi_reduction <add>, %49, %cst_21 [1] : vector<8x8xf32> to vector<8xf32>
      %52 = vector.shape_cast %51 : vector<8xf32> to vector<8x1xf32>
      %53 = arith.addf %50, %52 : vector<8x1xf32>
      %54 = vector.broadcast %46 : vector<8x1xf32> to vector<8x16xf32>
      %55 = arith.mulf %54, %arg12 : vector<8x16xf32>
      %cst_22 = arith.constant dense<0.000000e+00> : vector<8x16xf32>
      %56 = tpu.matmul %49, %29, %cst_22 {dimension_numbers = #tpu.dot_dimension_numbers<[1], [0], [0], [1], [0, 0, 1, 1], [], []>} : vector<8x8xf32>, vector<8x16xf32>, vector<8x16xf32> -> vector<8x16xf32>
      %57 = arith.addf %55, %56 : vector<8x16xf32>
      scf.yield %44, %53, %57 : vector<8x1xf32>, vector<8x1xf32>, vector<8x16xf32>
    }
    %19 = vector.broadcast %18#1 : vector<8x1xf32> to vector<8x16xf32>
    %20 = arith.divf %18#2, %19 : vector<8x16xf32>
    %c0_10 = arith.constant 0 : index
    %c0_11 = arith.constant 0 : index
    %c0_12 = arith.constant 0 : index
    %21 = vector.load %arg6[%c0_10, %c0_11, %c0_12] : memref<1x8x16xf32, #tpu.memory_space<vmem>>, vector<1x8x16xf32>
    %22 = vector.shape_cast %21 : vector<1x8x16xf32> to vector<8x16xf32>
    %23 = vector.shape_cast %20 : vector<8x16xf32> to vector<1x8x16xf32>
    tpu.vector_store %arg6[%c0_10, %c0_11, %c0_12], %23 {strides = array<i32>} : memref<1x8x16xf32, #tpu.memory_space<vmem>>, vector<1x8x16xf32>,
    return
  }
  func.func @transform_0(%arg0: i32, %arg1: i32) -> (i32, i32, i32) {
    %c0_i32 = arith.constant 0 : i32
    %c0_i32_0 = arith.constant 0 : i32
    %c0_i32_1 = arith.constant 0 : i32
    return %arg0, %c0_i32, %c0_i32_0 : i32, i32, i32
  }
  func.func @transform_1(%arg0: i32, %arg1: i32) -> (i32, i32) {
    %c0_i32 = arith.constant 0 : i32
    %c0_i32_0 = arith.constant 0 : i32
    %c0_i32_1 = arith.constant 0 : i32
    return %c0_i32, %c0_i32_0 : i32, i32
  }
  func.func @transform_2(%arg0: i32, %arg1: i32) -> (i32, i32) {
    %c0_i32 = arith.constant 0 : i32
    %c0_i32_0 = arith.constant 0 : i32
    %c0_i32_1 = arith.constant 0 : i32
    return %c0_i32, %c0_i32_0 : i32, i32
  }
  func.func @transform_3(%arg0: i32, %arg1: i32) -> (i32, i32) {
    %c0_i32 = arith.constant 0 : i32
    %c0_i32_0 = arith.constant 0 : i32
    %c0_i32_1 = arith.constant 0 : i32
    return %c0_i32, %c0_i32_0 : i32, i32
  }
  func.func @transform_4(%arg0: i32, %arg1: i32) -> (i32, i32, i32) {
    %c0_i32 = arith.constant 0 : i32
    %c0_i32_0 = arith.constant 0 : i32
    return %arg0, %arg1, %c0_i32 : i32, i32, i32
  }
}

</mosaic_0001>

<bundles_post_ra>
// kernel: tpu_custom_call.1
= control target key start
LH: loop header
LB: loop body
LE: loop exit
PB: predicated region body
PF: predicated region fallthrough
CT: control target
= control target key end

     0   :  { %9 = vsyncpa [#allocation5], 0  ;;  %s1389_s0 = inlined_call_operand.vmem [shape: f32[2,8,64], index: 0, kind: input, shape index: {}]   ;;  %s1390_s1 = inlined_call_operand.vmem [shape: f32[64,16], index: 1, kind: input, shape index: {}]   ;;  %s1391_s2 = inlined_call_operand.vmem [shape: f32[64,16], index: 2, kind: input, shape index: {}]   ;;  %s1392_s3 = inlined_call_operand.vmem [shape: f32[64,16], index: 3, kind: input, shape index: {}]   ;;  %s1393_s4 = inlined_call_operand.hbm [shape: f32[2,8,16], index: 4, kind: output, shape index: {}]  }
   0x1   :  { %11 = vsyncpa [#allocation5 + $0x1], 0  ;;  %s1154_s15 = smov 0   ;;  %s1156_s16 = smov 0  }
   0x2   :  { %s1158_s17 = smov 0   ;;  %s1160_s18 = smov 0  }
   0x3   :  { %s1162_s19 = smov 0   ;;  %s1164_s20 = smov 0  }
   0x4 LB: > { %s761_s21 = sadd.s32 4294967295, %s1105_s20   ;;  %s762_s22 = sadd.s32 4294967294, %s1105_s20   ;;  %s1105_s20 = sphi %s1164_s20, %s17_s20   ;;  %s1101_s19 = sphi %s1162_s19, %s1400_s19   ;;  %s1097_s18 = sphi %s1160_s18, %s1399_s18   ;;  %s1093_s17 = sphi %s1158_s17, %s1398_s17   ;;  %s1089_s16 = sphi %s1156_s16, %s1397_s16   ;;  %s1085_s15 = sphi %s1154_s15, %s1396_s15  }
   0x5   : > { %s29_s23 = sadd.s32 1, %s1101_s19  ;;  %s127_s24 = sadd.s32 1, %s1093_s17 }
   0x6   : > { %p31_p0 = scmp.ge.s32.totalorder %s29_s23, 2  ;;  %p137_p1 = scmp.ne.s32.totalorder %s1093_s17, %s1089_s16 }
   0x7   : > { %p138_p2 = scmp.eq.s32.totalorder %s761_s21, 1  ;;  %p143_p3 = scmp.ne.s32.totalorder %s1089_s16, %s1085_s15 }
   0x8   : > { %s1402_s23 = smov (%p31_p0, %s29_s23), 0  ;;  %p144_p5 = scmp.eq.s32.totalorder %s762_s22, 1 }
   0x9   : > { %p1194_p4 = por %p138_p2, %p137_p1  ;;  %s122_s26 = ssub.s32 %s1101_s19, %s1402_s23 }
   0xa   : > { %p765_p6 = scmp.ge.s32.totalorder %s1105_s20, 1  ;;  %p125_p7 = scmp.eq.s32.totalorder %s122_s26, 0 }
   0xb   : > { %p1201_p8 = por %p144_p5, %p143_p3  ;;  %p178_p9 = scmp.lt.s32.totalorder %s1105_s20, 3 }
   0xc   : > { %s1207_s28 = scalar_select %p125_p7, %s1093_s17, %s127_s24  }
   0xd   : > { %p179_p10 = pnand %p765_p6, %p178_p9 }
   0xe   : > { %s200_s29 = sand.u32 (!%p179_p10), 1, %s1089_s16   ;;  %v212_v0 = vld [vmem:[%s1391_s2] sm:$0xff] (!%p179_p10)  ;;  %v213_v1 = vld [vmem:[%s1391_s2 + $0x8] sm:$0xff] (!%p179_p10)  ;;  %v214_v2 = vld [vmem:[%s1391_s2 + $0x10] sm:$0xff] (!%p179_p10)  ;;  %v1123_v3 = vmov (!%p179_p10), 0.0|0.0   ;;  %p203_p11 = scmp.lt.s32.totalorder (!%p179_p10), %s1097_s18, 1 }
   0xf   : > { %182 = sbr.rel (%p179_p10) target bundleno = 870 (0x366), region = 36  ;;  %s1221_s10 = sshll.u32 (!%p179_p10), %s200_s29, 3  ;;  %877 = vmatprep.subr.bf16.mxu0 (!%p179_p10), %v1123_v3  ;;  %v878_v4 = vpack.c.bf16 (!%p179_p10), %v213_v1, %v212_v0  ;;  %v215_v5 = vld [vmem:[%s1391_s2 + $0x18] sm:$0xff] (!%p179_p10)  ;;  %889 = vmatprep.subr.bf16.mxu1 (!%p179_p10), %v1123_v3  ;;  %vm1124_vm0 = vmmov (!%p179_p10), 0   ;;  %v1125_v6 = vmov (!%p179_p10), 0.0   ;;  %v296_v7 = vld [vmem:[%s1392_s3] sm:$0xff] (!%p179_p10) }
  0x10   : > { %826 = vmatprep.mubr.msk.f32.mxu0 (!%p179_p10), %vm1124_vm0, %v1125_v6  ;;  %845 = vmatprep.mubr.msk.f32.mxu1 (!%p179_p10), %vm1124_vm0, %v1125_v6  ;;  %v881_v8 = vpack.c.bf16 (!%p179_p10), %v215_v5, %v214_v2  ;;  %v216_v9 = vld [vmem:[%s1391_s2 + $0x20] sm:$0xff] (!%p179_p10)  ;;  %v297_v10 = vld [vmem:[%s1392_s3 + $0x8] sm:$0xff] (!%p179_p10)  ;;  %v298_v13 = vld [vmem:[%s1392_s3 + $0x10] sm:$0xff] (!%p179_p10)  ;;  %vm220_vm1 = vcmask (!%p179_p10), 523264   ;;  %vm294_vm2 = vcmask (!%p179_p10), 130048   ;;  %s202_s22 = scalar_lea.vmem (!%p179_p10), [#allocation4], %s1221_s10 }
  0x11   : > { %879 = vmatpush3.bf16.msra.mxu0 (!%p179_p10), %v878_v4  ;;  %v217_v11 = vld [vmem:[%s1391_s2 + $0x28] sm:$0xff] (!%p179_p10)  ;;  %v890_v12 = vpack.c.bf16 (!%p179_p10), %v297_v10, %v296_v7  ;;  %v299_v14 = vld [vmem:[%s1392_s3 + $0x18] sm:$0xff] (!%p179_p10)  ;;  %v300_v17 = vld [vmem:[%s1392_s3 + $0x20] sm:$0xff] (!%p179_p10)  ;;  %v1107_v46 = vmov (!%p179_p10), 0.0   ;;  %v1111_v47 = vmov (!%p179_p10), 0.0   ;;  %v1115_v48 = vmov (!%p179_p10), -inf  }
  0x12   : > { %880 = vmatprep.subr.bf16.mxu0 (!%p179_p10), %v1123_v3  ;;  %v893_v15 = vpack.c.bf16 (!%p179_p10), %v299_v14, %v298_v13  ;;  %v884_v16 = vpack.c.bf16 (!%p179_p10), %v217_v11, %v216_v9  ;;  %v301_v18 = vld [vmem:[%s1392_s3 + $0x28] sm:$0xff] (!%p179_p10)  ;;  %v218_v19 = vld [vmem:[%s1391_s2 + $0x30] sm:$0xff] (!%p179_p10)  ;;  %v219_v20 = vld [vmem:[%s1391_s2 + $0x38] sm:$0xff] (!%p179_p10)  ;;  %s1316_s24 = smov (!%p179_p10), 0  }
  0x13   : > { %891 = vmatpush3.bf16.msra.mxu1 (!%p179_p10), %v890_v12  ;;  %v896_v21 = vpack.c.bf16 (!%p179_p10), %v301_v18, %v300_v17  ;;  %v887_v22 = vpack.c.bf16 (!%p179_p10), %v219_v20, %v218_v19  ;;  %v302_v23 = vld [vmem:[%s1392_s3 + $0x30] sm:$0xff] (!%p179_p10)  ;;  %v303_v24 = vld [vmem:[%s1392_s3 + $0x38] sm:$0xff] (!%p179_p10)  ;;  %v378_v25 = vld [vmem:[%s1390_s1] sm:$0xff] (!%p179_p10) }
  0x14   : > { %892 = vmatprep.subr.bf16.mxu1 (!%p179_p10), %v1123_v3  ;;  %v379_v26 = vld [vmem:[%s1390_s1 + $0x8] sm:$0xff] (!%p179_p10)  ;;  %v899_v27 = vpack.c.bf16 (!%p179_p10), %v303_v24, %v302_v23  ;;  %v380_v30 = vld [vmem:[%s1390_s1 + $0x10] sm:$0xff] (!%p179_p10)  ;;  %v381_v31 = vld [vmem:[%s1390_s1 + $0x18] sm:$0xff] (!%p179_p10) }
  0x15   : > { %882 = vmatpush3.bf16.msra.mxu0 (!%p179_p10), %v881_v8  ;;  %v902_v29 = vpack.c.bf16 (!%p179_p10), %v379_v26, %v378_v25  ;;  %v905_v32 = vpack.c.bf16 (!%p179_p10), %v381_v31, %v380_v30  ;;  %v382_v33 = vld [vmem:[%s1390_s1 + $0x20] sm:$0xff] (!%p179_p10)  ;;  %v383_v34 = vld [vmem:[%s1390_s1 + $0x28] sm:$0xff] (!%p179_p10)  ;;  %v384_v36 = vld [vmem:[%s1390_s1 + $0x30] sm:$0xff] (!%p179_p10) }
  0x16   : > { %s204_s11 = scalar_select %p203_p11, %s1097_s18, 1  ;;  %883 = vmatprep.subr.bf16.mxu0 %v1123_v3  ;;  %v908_v35 = vpack.c.bf16 %v383_v34, %v382_v33  ;;  %v385_v37 = vld [vmem:[%s1390_s1 + $0x38] sm:$0xff] }
  0x17   : > { %894 = vmatpush3.bf16.msra.mxu1 %v893_v15  ;;  %v911_v38 = vpack.c.bf16 %v385_v37, %v384_v36 }
  0x18   : > { %s767_s5 = sshll.u32 %s204_s11, 3  ;;  %895 = vmatprep.subr.bf16.mxu1 %v1123_v3 }
  0x19   : > { %885 = vmatpush3.bf16.msra.mxu0 %v884_v16  ;;  %s206_s11 = scalar_lea.vmem %s1389_s0, %s767_s5 }
  0x1a   : > { %886 = vmatprep.subr.bf16.mxu0 %v1123_v3  ;;  %v211_v28 = vld [vmem:[%s206_s11] sm:$0xff] }
  0x1b   : > { %897 = vmatpush3.bf16.msra.mxu1 %v896_v21 }
  0x1c   : > { %898 = vmatprep.subr.bf16.mxu1 %v1123_v3 }
  0x1d   : > { %888 = vmatpush3.bf16.msra.mxu0 %v887_v22 }
  0x1e   : > { %901 = vmatprep.subr.bf16.mxu0 %v1123_v3 }
  0x1f   : > { %900 = vmatpush3.bf16.msra.mxu1 %v899_v27 }
  0x20   : > { %827 = vmatmul.mubr.msk.f32.vlgmr.msra.gmra.mrb[0].mxu0 %vm220_vm1, %v211_v28 }
  0x21   : > { %903 = vmatpush3.bf16.msra.mxu0 %v902_v29  ;;  %864 = vmatprep.mubr.msk.f32.mxu0 %vm1124_vm0, %v1125_v6 }
  0x22   : > { %904 = vmatprep.subr.bf16.mxu0 %v1123_v3  ;;  %846 = vmatmul.mubr.msk.f32.vlgmr.msra.gmra.mrb[0].mxu1 %vm220_vm1, %v211_v28 }
  0x25   : > { %906 = vmatpush3.bf16.msra.mxu0 %v905_v32 }
  0x26   : > { %907 = vmatprep.subr.bf16.mxu0 %v1123_v3 }
  0x29   : > { %909 = vmatpush3.bf16.msra.mxu0 %v908_v35 }
  0x2a   : > { %910 = vmatprep.subr.bf16.mxu0 %v1123_v3 }
  0x2d   : > { %912 = vmatpush3.bf16.msra.mxu0 %v911_v38 }
  0x30   : > { %865 = vmatmul.mubr.msk.f32.vlgmr.msra.gmra.mrb[2].mxu0 %vm220_vm1, %v211_v28 }
  0xf3   : > { %v290_v39 = vpop.f32.mrb[0].mxu0 }
  0xf4   : > { %295 = vst.msk [vmem:[#allocation2] sm:$0xff] %vm294_vm2, %v290_v39  ;;  %v828_v40 = vpop.f32.mrb[1].mxu0 }
  0xf5   : > { %v370_v41 = vpop.f32.mrb[0].mxu1 }
  0xf6   : > { %374 = vst.msk [vmem:[#allocation3] sm:$0xff] %vm294_vm2, %v370_v41  ;;  %v847_v42 = vpop.f32.mrb[1].mxu1 }
 0x103   : > { %v456_v43 = vpop.f32.mrb[2].mxu0 }
 0x104   : > { %v1313_v44 = vmul.f32 0.125, %v456_v43  ;;  %v866_v45 = vpop.f32.mrb[3].mxu0 }
 0x105 LB: >> { %v1126_v49 = vmov 0.0   ;;  %vm1127_vm3 = vmmov 0   ;;  %s771_s26 = sshll.u32 %s1121_s24, 3  ;;  %v553_v51 = vlaneseq  ;;  %vm563_vm5 = vcmask 64512   ;;  %s465_s24 = sadd.s32 1, %s1121_s24   ;;  %s1121_s24 = sphi %s1316_s24, %s465_s24   ;;  %v1117_v48 = vphi %v1115_v48, %v1116_v48   ;;  %v1113_v47 = vphi %v1111_v47, %v1112_v47   ;;  %v1109_v46 = vphi %v1107_v46, %v1108_v46  }
 0x106   : >> { %867 = vmatprep.subr.mxu0 %v1126_v49  ;;  %869 = vmatprep.mubr.msk.f32.mxu0 %vm1127_vm3, %v1126_v49  ;;  %s472_s30 = scalar_lea.vmem [#allocation2], %s771_s26  ;;  %v559_v53 = vstv %s771_s26  ;;  %s474_s5 = scalar_lea.vmem [#allocation3], %s771_s26 }
 0x107   : >> { %872 = vmatprep.subr.mxu1 %v1126_v49  ;;  %874 = vmatprep.mubr.msk.f32.mxu1 %vm1127_vm3, %v1126_v49  ;;  %v473_v50 = vld [vmem:[%s472_s30] sm:$0xff]  ;;  %v558_v52 = vand.u32 127, %v553_v51  ;;  %v554_v54 = vshrl.u32 %v553_v51, 7  ;;  %p464_p12 = scmp.ge.s32.totalorder %s465_s24, 1 }
 0x108   : >> { %868 = vmatpush3.xpose.msk.msra.mxu0 %vm294_vm2, %v473_v50  ;;  %v475_v60 = vld [vmem:[%s474_s5] sm:$0xff]  ;;  %s776_s6 = sshll.u32 (%p464_p12), %s1097_s18, 7  ;;  %s673_s7 = sshll.u32 (%p464_p12), %s202_s22, 4  ;;  %s1339_s7 = int_to_ptr.vmem [resolvable:$true] %s673_s7 }
 0x109   : >> { %v560_v55 = vadd.s32 %v559_v53, %v558_v52  ;;  %873 = vmatpush3.msra.mxu1 %v475_v60  ;;  %s1337_s12 = scalar_lea.hbm (%p464_p12), %s1393_s4, %s776_s6  ;;  %s659_s13 = scalar_lea.sflag (%p464_p12), [#allocation5], %s200_s29 }
 0x10a   : > { %s1011_s18 = scalar_lea.vmem (%p464_p12), %s1339_s7, 128  ;;  %s1128_s11 = smov (%p464_p12), [#allocation4]  }
 0x10b   : >> { %870 = vmatmul.mubr.msk.f32.vlgmr.msra.gmra.mrb[0].mxu0 %vm294_vm2, %v1313_v44  ;;  %vm561_vm4 = vcmp.le.s32.totalorder %v560_v55, %v554_v54  ;;  %p1012_p13 = scmp.ne.s32.totalorder (%p464_p12), %s1339_s7, %s1011_s18  ;;  %s1015_s14 = sshll.u32 (%p464_p12), %s1128_s11, 4  ;;  %s1016_s14 = int_to_ptr.vmem [resolvable:$false] %s1015_s14 }
 0x10c   : > { %s1017_s21 = scalar_lea.vmem (%p464_p12), %s1016_s14, 256  ;;  %p1018_p2 = scmp.lt.s32.totalorder (%p464_p12), %s1339_s7, %s1016_s14 }
 0x10d   : > { %p1013_p0 = pnand (%p464_p12), %p1012_p13, %p1194_p4  ;;  %p1019_p3 = scmp.lt.s32.totalorder (%p464_p12), %s1017_s21, %s1011_s18 }
 0x10f   : > { %p1014_p1 = pneg (%p464_p12), %p1013_p0  ;;  %p1020_p5 = por (%p464_p12), %p1019_p3, %p1018_p2 }
 0x111   : > { %p1021_p6 = pnand (%p464_p12), %p1020_p5, %p1014_p1 }
 0x1de   : >> { %v549_v56 = vpop.f32.mrb[0].mxu0 }
 0x1df   : >> { %v562_v57 = vsel %vm561_vm4, %v549_v56, -inf  ;;  %v871_v58 = vpop.f32.mrb[1].mxu0 }
 0x1e0   : >> { %v564_v59 = vsel %vm563_vm5, %v562_v57, -inf }
 0x1e1   : >> { %565 = vmax.xlane.f32.xlu0 %v564_v59 }
 0x26e   : >> { %v566_v61 = vpop.xlane.xlu0 %565 }
 0x26f   : >> { %v567_v62 = vmax.f32 %v1117_v48, %v566_v61  }
 0x271   : >> { %v568_v63 = vsub.f32 %v1117_v48, %v567_v62  ;;  %v571_v0 = vsub.f32 %v562_v57, %v567_v62  ;;  %v1116_v48 = vmov %v567_v62  }
 0x273   : >> { %v572_v1 = vmul.f32 1.442695, %v571_v0  ;;  %v569_v4 = vmul.f32 1.442695, %v568_v63 }
 0x275   : >> { %1005 = vpow2.f32 %v572_v1 }
 0x276   : >> { %1007 = vpow2.f32 %v569_v4 }
 0x27f   : >> { %v1006_v2 = vpop.eup %1005 }
 0x280   : >> { %875 = vmatmul.mubr.msk.f32.vlgmr.msra.gmra.mrb[0].mxu1 %vm563_vm5, %v1006_v2  ;;  %v575_v3 = vsel %vm563_vm5, %v1006_v2, 0.0  ;;  %v1008_v5 = vpop.eup %1007 }
 0x281   : >> { %576 = vadd.xlane.f32.xlu0 %v575_v3  ;;  %v574_v6 = vmul.f32 %v1113_v47, %v1008_v5  ;;  %v579_v9 = vmul.f32 %v1109_v46, %v1008_v5 }
 0x30e   : >> { %v577_v7 = vpop.xlane.xlu0 %576 }
 0x30f   : >> { %v578_v8 = vadd.f32 %v577_v7, %v574_v6  }
 0x311   : >> { %v1112_v47 = vmov %v578_v8   ;;  %1009 = vrcp.f32 (%p464_p12), %v578_v8 }
 0x31b   : > { %v1010_v13 = vpop.eup (%p464_p12), %1009 }
 0x350   : > { %467 = sbr.rel (!%p464_p12) target bundleno = 261 (0x105), region = 85 }
 0x353   : >> { %v649_v10 = vpop.f32.mrb[0].mxu1 }
 0x354   : >> { %v653_v11 = vadd.f32 %v649_v10, %v579_v9   ;;  %v876_v12 = vpop.f32.mrb[1].mxu1 }
 0x356   : >> { %v1108_v46 = vmov %v653_v11   ;;  %v655_v14 = vmul.f32 (%p464_p12), %v1010_v13, %v653_v11 }
 0x358   : > { %657 = vst.msk [vmem:[%s202_s22] sm:$0xff] %vm294_vm2, %v655_v14 }
 0x359   : > { %1024 = shalt.err (!%p1021_p6)
}
 0x35a   : > { %s1025_s29 = scalar_lea.hbm %s1337_s12, 128  ;;  %s1029_s24 = scalar_lea.hbm %s1393_s4, 256 }
 0x35b   : > { %p1026_p7 = scmp.ne.s32.totalorder %s1337_s12, %s1025_s29  ;;  %p1030_p11 = scmp.lt.u32.totalorder %s1337_s12, %s1393_s4 }
 0x35c   : > { %p1031_p12 = scmp.lt.u32.totalorder %s1029_s24, %s1025_s29  ;;  %p1033_p0 = scmp.lt.u32.totalorder %s1025_s29, %s1337_s12 }
 0x35d   : > { %p1027_p9 = pnand %p1026_p7, %p1194_p4 }
 0x35e   : > { %p1032_p13 = por %p1031_p12, %p1030_p11 }
 0x35f   : > { %p1028_p10 = pneg %p1027_p9 }
 0x360   : > { %p1034_p1 = por %p1033_p0, %p1032_p13 }
 0x362   : > { %p1035_p2 = pnand %p1034_p1, %p1028_p10 }
 0x364   : > { %1038 = shalt.err (!%p1035_p2)
}
 0x365   : > { %913 = dma.vmem_to_hbm [thread:$0]  (%p1194_p4), %s1339_s7, 128, %s1337_s12, %s659_s13  }
 0x366 PF: > { %p919_p3 = scmp.ge.s32.totalorder %s1105_s20, 2  ;;  %s685_s5 = sand.u32 1, %s1085_s15  }
 0x367   : > { %s686_s6 = scalar_lea.sflag [#allocation5], %s685_s5 }
 0x368   : > { %p916_p5 = pnand %p919_p3, %p1201_p8 }
 0x36a   : > { %1080 = dma.done.wait (!%p916_p5), %s686_s6, 128  }
 0x36b   : > { %1082 = vsyncadd (!%p916_p5), %s686_s6, 4294967168  ;;  %s17_s20 = sadd.s32 1, %s1105_s20   ;;  %s1396_s15 = smov %s1089_s16 }
 0x36c   : > { %p14_p6 = scmp.ge.s32.totalorder %s17_s20, 4   ;;  %s1397_s16 = smov %s1093_s17 }
 0x36d   : > { %s1398_s17 = smov %s1207_s28  ;;  %s1399_s18 = smov %s1101_s19 }
 0x36e   : > { %s1400_s19 = smov %s1402_s23  ;;  %16 = sbr.rel (!%p14_p6) target bundleno = 4 (0x4), region = 96 }
 0x375   :  { %691 = vsyncpa [#allocation5], 1 }
 0x376   :  { %693 = vsyncpa [#allocation5 + $0x1], 1 }

</bundles_post_ra>
